<compile_context>
chip_gen: v7x
topology: tpu7x:2x2x1
jax: 0.10.0
libtpu: 0.0.40
codegen_flags: <defaults>
</compile_context>

<pallas_src>
import jax
import jax.numpy as jnp
from jax.experimental import pallas as pl
from jax.experimental.pallas import tpu as pltpu


def _mean_pool_kernel(x_ref, mask_ref, inv_ref, o_ref, acc_ref):
    # x_ref:    (B, tS, tH) native dtype (bf16/f32) in VMEM
    # mask_ref: (B, 1, tS)  x.dtype in VMEM (lane-dense along S)
    # inv_ref:  (B, 1)      f32 precomputed 1 / clamp(sum_s(mask), 1e-9)
    # o_ref:    (B, tH)     f32 output block (same block for every S step)
    # acc_ref:  (B, 1, tH)  f32 VMEM scratch accumulator
    s = pl.program_id(1)  # reduction axis (last grid axis)

    @pl.when(s == 0)
    def _init():
        acc_ref[...] = jnp.zeros_like(acc_ref)

    # MXU batched matmul contracting the S tile; cross-step accumulation stays in
    # the f32 VMEM scratch.  (Mem-bound: the matmul hides under the x-tile DMA.)
    acc_ref[...] += jnp.einsum(
        "bqs,bsh->bqh", mask_ref[...], x_ref[...],
        preferred_element_type=jnp.float32)

    @pl.when(s == pl.num_programs(1) - 1)
    def _finalize():
        acc = acc_ref[...][:, 0, :]                               # (B, tH) f32
        o_ref[...] = (acc * inv_ref[...]).astype(o_ref.dtype)


def _pick_tile(full: int, align: int, cap: int) -> int:
    """Tile that divides `full`, is a multiple of `align` (or equals full), and <= cap if possible."""
    if full <= cap or full % align != 0:
        return full
    t = align
    while t * 2 <= cap and full % (t * 2) == 0:
        t *= 2
    return t


def mean_pooling(last_hidden_state: jax.Array, attention_mask: jax.Array) -> jax.Array:
    """Pallas equivalent of MeanPooling.forward.

    last_hidden_state: [B, S, H] (any float dtype; accumulation in float32)
    attention_mask:    [B, S]    (int or float)
    returns:           [B, H]    float32
    """
    B, S, H = last_hidden_state.shape
    x = last_hidden_state  # keep native dtype on the wire (halves HBM traffic for bf16)

    # Tiny wrapper-side glue on the mask only (B*S elements, negligible HBM traffic).
    mask_f = attention_mask.astype(jnp.float32)                       # [B, S]
    cnt = jnp.maximum(jnp.sum(mask_f, axis=1, keepdims=True), 1e-9)   # [B, 1]
    inv = (1.0 / cnt).astype(jnp.float32)                             # [B, 1]
    # Mask operand for the MXU matmul, in x's dtype ({0,1} is exact in bf16).
    mask_mm = mask_f.astype(x.dtype).reshape(B, 1, S)                 # [B, 1, S]

    # ---- tile selection -------------------------------------------------------------
    t_s = _pick_tile(S, 128, 512)   # mask last dim must be a multiple of 128 (or == S)
    t_h = _pick_tile(H, 128, 1024)  # lane-dense output tiles (multiple of 128 or == H)

    # Keep a single x tile <= ~4 MiB so two pipeline buffers stay well under the
    # default scoped VMEM on every generation (16 MiB v5e / 32 MiB v6e / 32-of-64 MiB v7x).
    itemsize = jnp.dtype(x.dtype).itemsize
    tile_budget = 4 * 1024 * 1024
    while B * t_s * t_h * itemsize > tile_budget and t_s % 256 == 0:
        t_s //= 2
    while B * t_s * t_h * itemsize > tile_budget and t_h % 256 == 0:
        t_h //= 2

    grid = (H // t_h, S // t_s)  # (parallel H, reduction S last)

    out = pl.pallas_call(
        _mean_pool_kernel,
        out_shape=jax.ShapeDtypeStruct((B, H), jnp.float32),
        grid_spec=pltpu.PrefetchScalarGridSpec(
            num_scalar_prefetch=0,
            grid=grid,
            in_specs=[
                pl.BlockSpec((B, t_s, t_h), lambda h, s: (0, s, h)),   # hidden states
                pl.BlockSpec((B, 1, t_s), lambda h, s: (0, 0, s)),     # mask (lane-dense)
                pl.BlockSpec((B, 1), lambda h, s: (0, 0)),             # 1/clamp(count), fetched once
            ],
            out_specs=pl.BlockSpec((B, t_h), lambda h, s: (0, h)),     # same block across S
            scratch_shapes=[pltpu.VMEM((B, 1, t_h), jnp.float32)],
        ),
        compiler_params=pltpu.CompilerParams(
            dimension_semantics=("parallel", "arbitrary"),
            vmem_limit_bytes=32 * 1024 * 1024,
        ),
    )(x, mask_mm, inv)
    return out


def _reference(last_hidden_state, attention_mask):
    m = attention_mask.astype(jnp.float32)[..., None]
    x = last_hidden_state.astype(jnp.float32)
    s = jnp.sum(x * m, axis=1)
    c = jnp.maximum(jnp.sum(m, axis=1), 1e-9)
    return s / c


if __name__ == "__main__":
    key = jax.random.PRNGKey(0)
    k1, k2 = jax.random.split(key)

    B, S, H = 2, 8, 32
    last_hidden_state = jax.random.normal(k1, (B, S, H), dtype=jnp.float32)
    # Binary attention mask with some padding positions.
    attention_mask = (jax.random.uniform(k2, (B, S)) > 0.3).astype(jnp.int32)

    out = jax.block_until_ready(mean_pooling(last_hidden_state, attention_mask))
    ref = _reference(last_hidden_state, attention_mask)
    assert out.shape == (B, H)
    assert jnp.allclose(out, ref, atol=1e-5, rtol=1e-5), "f32 mismatch vs reference"

    # Also exercise the native-dtype (bf16) MXU path.
    x_bf16 = last_hidden_state.astype(jnp.bfloat16)
    out_bf16 = jax.block_until_ready(mean_pooling(x_bf16, attention_mask))
    ref_bf16 = _reference(x_bf16, attention_mask)
    assert jnp.allclose(out_bf16, ref_bf16, atol=2e-3, rtol=2e-3), "bf16 mismatch vs reference"

    print("KERNEL_OK")
</pallas_src>

<mosaic_0001>
module attributes {stable_mosaic.version = 11 : i64} {
  func.func @_mean_pool_kernel(%arg0: i32, %arg1: i32, %arg2: memref<2x8x32xf32, #tpu.memory_space<vmem>>, %arg3: memref<2x1x8xf32, #tpu.memory_space<vmem>>, %arg4: memref<2x1xf32, #tpu.memory_space<vmem>>, %arg5: memref<2x32xf32, #tpu.memory_space<vmem>>, %arg6: memref<2x1x32xf32, #tpu.memory_space<vmem>>) attributes {dimension_semantics = [#tpu.dimension_semantics<parallel>, #tpu.dimension_semantics<arbitrary>], iteration_bounds = array<i64: 1, 1>, scalar_prefetch = 0 : i64, scratch_operands = 1 : i64, tpu.core_type = #tpu.core_type<tc>, window_params = [{transform_indices = @transform_0, window_bounds = array<i64: 2, 8, 32>}, {transform_indices = @transform_1, window_bounds = array<i64: 2, 1, 8>}, {pipeline_mode = #tpu.pipeline_mode<synchronous>, transform_indices = @transform_2, window_bounds = array<i64: 2, 1>}, {transform_indices = @transform_3, window_bounds = array<i64: 2, 32>}]} {
    %c0_i32 = arith.constant 0 : i32
    %0 = arith.cmpi eq, %arg1, %c0_i32 : i32
    %1 = arith.extui %0 : i1 to i32
    %c0_i32_0 = arith.constant 0 : i32
    %2 = arith.cmpi ne, %1, %c0_i32_0 : i32
    scf.if %2 {
      %cst_14 = arith.constant 0.000000e+00 : f32
      %12 = vector.broadcast %cst_14 : f32 to vector<2x1x32xf32>
      %c0_15 = arith.constant 0 : index
      %c0_16 = arith.constant 0 : index
      %c0_17 = arith.constant 0 : index
      %13 = vector.load %arg6[%c0_15, %c0_16, %c0_17] : memref<2x1x32xf32, #tpu.memory_space<vmem>>, vector<2x1x32xf32>
      tpu.vector_store %arg6[%c0_15, %c0_16, %c0_17], %12 {strides = array<i32>} : memref<2x1x32xf32, #tpu.memory_space<vmem>>, vector<2x1x32xf32>,
    } else {
    }
    %c0 = arith.constant 0 : index
    %c0_1 = arith.constant 0 : index
    %c0_2 = arith.constant 0 : index
    %3 = vector.load %arg6[%c0, %c0_1, %c0_2] : memref<2x1x32xf32, #tpu.memory_space<vmem>>, vector<2x1x32xf32>
    %c0_3 = arith.constant 0 : index
    %c0_4 = arith.constant 0 : index
    %c0_5 = arith.constant 0 : index
    %4 = vector.load %arg3[%c0_3, %c0_4, %c0_5] : memref<2x1x8xf32, #tpu.memory_space<vmem>>, vector<2x1x8xf32>
    %c0_6 = arith.constant 0 : index
    %c0_7 = arith.constant 0 : index
    %c0_8 = arith.constant 0 : index
    %5 = vector.load %arg2[%c0_6, %c0_7, %c0_8] : memref<2x8x32xf32, #tpu.memory_space<vmem>>, vector<2x8x32xf32>
    "tpu.trace_start"() <{level = 10 : i32, message = "bqs,bsh->bqh"}> : () -> ()
    %cst = arith.constant dense<0.000000e+00> : vector<2x1x32xf32>
    %6 = tpu.matmul %4, %5, %cst {dimension_numbers = #tpu.dot_dimension_numbers<[2], [1], [1], [2], [0, 0, 0, 1, 1, 2], [0], [0]>} : vector<2x1x8xf32>, vector<2x8x32xf32>, vector<2x1x32xf32> -> vector<2x1x32xf32>
    "tpu.trace_stop"() : () -> ()
    %7 = arith.addf %3, %6 : vector<2x1x32xf32>
    %c0_9 = arith.constant 0 : index
    %c0_10 = arith.constant 0 : index
    %c0_11 = arith.constant 0 : index
    %8 = vector.load %arg6[%c0_9, %c0_10, %c0_11] : memref<2x1x32xf32, #tpu.memory_space<vmem>>, vector<2x1x32xf32>
    tpu.vector_store %arg6[%c0_9, %c0_10, %c0_11], %7 {strides = array<i32>} : memref<2x1x32xf32, #tpu.memory_space<vmem>>, vector<2x1x32xf32>,
    %c0_i32_12 = arith.constant 0 : i32
    %9 = arith.cmpi eq, %arg1, %c0_i32_12 : i32
    %10 = arith.extui %9 : i1 to i32
    %c0_i32_13 = arith.constant 0 : i32
    %11 = arith.cmpi ne, %10, %c0_i32_13 : i32
    scf.if %11 {
      %c0_14 = arith.constant 0 : index
      %c0_15 = arith.constant 0 : index
      %c0_16 = arith.constant 0 : index
      %12 = vector.load %arg6[%c0_14, %c0_15, %c0_16] : memref<2x1x32xf32, #tpu.memory_space<vmem>>, vector<2x1x32xf32>
      %13 = vector.shape_cast %12 : vector<2x1x32xf32> to vector<2x32xf32>
      %c0_17 = arith.constant 0 : index
      %c0_18 = arith.constant 0 : index
      %14 = vector.load %arg4[%c0_17, %c0_18] : memref<2x1xf32, #tpu.memory_space<vmem>>, vector<2x1xf32>
      %15 = vector.broadcast %14 : vector<2x1xf32> to vector<2x32xf32>
      %16 = arith.mulf %13, %15 : vector<2x32xf32>
      %c0_19 = arith.constant 0 : index
      %c0_20 = arith.constant 0 : index
      %17 = vector.load %arg5[%c0_19, %c0_20] : memref<2x32xf32, #tpu.memory_space<vmem>>, vector<2x32xf32>
      tpu.vector_store %arg5[%c0_19, %c0_20], %16 {strides = array<i32>} : memref<2x32xf32, #tpu.memory_space<vmem>>, vector<2x32xf32>,
    } else {
    }
    return
  }
  func.func @transform_0(%arg0: i32, %arg1: i32) -> (i32, i32, i32) {
    %c0_i32 = arith.constant 0 : i32
    %c0_i32_0 = arith.constant 0 : i32
    return %c0_i32, %arg1, %arg0 : i32, i32, i32
  }
  func.func @transform_1(%arg0: i32, %arg1: i32) -> (i32, i32, i32) {
    %c0_i32 = arith.constant 0 : i32
    %c0_i32_0 = arith.constant 0 : i32
    %c0_i32_1 = arith.constant 0 : i32
    return %c0_i32, %c0_i32_0, %arg1 : i32, i32, i32
  }
  func.func @transform_2(%arg0: i32, %arg1: i32) -> (i32, i32) {
    %c0_i32 = arith.constant 0 : i32
    %c0_i32_0 = arith.constant 0 : i32
    %c0_i32_1 = arith.constant 0 : i32
    return %c0_i32, %c0_i32_0 : i32, i32
  }
  func.func @transform_3(%arg0: i32, %arg1: i32) -> (i32, i32) {
    %c0_i32 = arith.constant 0 : i32
    %c0_i32_0 = arith.constant 0 : i32
    return %c0_i32, %arg0 : i32, i32
  }
}

</mosaic_0001>

<bundles_post_ra>
// kernel: tpu_custom_call.1
= control target key start
LH: loop header
LB: loop body
LE: loop exit
PB: predicated region body
PF: predicated region fallthrough
CT: control target
= control target key end

     0   :  { %8 = vsyncpa [#allocation4], 0  ;;  %s389_s0 = inlined_call_operand.hbm [shape: f32[2,8,32], index: 0, kind: input, shape index: {}]   ;;  %s390_s1 = inlined_call_operand.vmem [shape: f32[2,1,8], index: 1, kind: input, shape index: {}]   ;;  %s391_s2 = inlined_call_operand.vmem [shape: f32[2,1], index: 2, kind: input, shape index: {}]   ;;  %s392_s3 = inlined_call_operand.hbm [shape: f32[2,32], index: 3, kind: output, shape index: {}]  }
   0x1   :  { %9 = vsyncpa [#allocation5], 0  ;;  %s324_s12 = smov [#allocation3]   ;;  %s276_s16 = scalar_lea.hbm %s389_s0, 256 }
   0x2   :  { %s15_s13 = sshll.u32 %s324_s12, 4  ;;  %p277_p0 = scmp.ne.s32.totalorder %s389_s0, %s276_s16  ;;  %s16_s13 = int_to_ptr.vmem [resolvable:$true] %s15_s13 }
   0x3   :  { %p280_p1 = scmp.lt.u32.totalorder %s276_s16, %s389_s0 }
   0x5   :  { %p282_p2 = pnand %p280_p1, %p277_p0 }
   0x7   :  { %285 = shalt.err (!%p282_p2)
}
   0x8   :  { %s286_s21 = scalar_lea.vmem %s16_s13, 256  ;;  %p291_p4 = scmp.lt.s32.totalorder %s16_s13, %s16_s13 }
   0x9   :  { %p287_p3 = scmp.ne.s32.totalorder %s16_s13, %s286_s21  ;;  %p292_p5 = scmp.lt.s32.totalorder %s286_s21, %s286_s21 }
   0xb   :  { %p293_p6 = por %p292_p5, %p291_p4 }
   0xd   :  { %p294_p7 = pnand %p293_p6, %p287_p3 }
   0xf   :  { %297 = shalt.err (!%p294_p7)
}
  0x10   :  { %s325_s22 = smov 128   ;;  %s326_s23 = smov 8  }
  0x11   :  { %21 = dma.hbm_to_vmem [thread:$0]  %s389_s0, 256, %s16_s13, [#allocation4], %s325_s22, %s325_s22, %s326_s23  }
  0x12   :  { %320 = dma.done.wait [#allocation4], 256  }
  0x13   :  { %321 = vsyncadd [#allocation4], 4294967040  ;;  %v327_v0 = vmov 0.0   ;;  %vm33_vm0 = vcmask 253952   ;;  %vm328_vm1 = vmmov 0   ;;  %v329_v1 = vmov 0  }
  0x14   :  { %257 = vmatprep.subr.mxu0 %v327_v0  ;;  %262 = vmatprep.subr.mxu1 %v327_v0  ;;  %34 = vst.msk [vmem:[#allocation2] sm:$0x1] %vm33_vm0, %v327_v0  ;;  %35 = vst.msk [vmem:[#allocation2 + $0x1] sm:$0x1] %vm33_vm0, %v327_v0  ;;  %vm42_vm2 = vcmask 64512   ;;  %v40_v2 = vld [vmem:[#allocation3] sm:$0xff]  ;;  %v204_v7 = vlaneseq }
  0x15   :  { %259 = vmatprep.mubr.msk.f32.mxu0 %vm328_vm1, %v327_v0  ;;  %264 = vmatprep.mubr.msk.f32.mxu1 %vm328_vm1, %v327_v0  ;;  %v41_v3 = vld [vmem:[#allocation3 + $0x8] sm:$0xff]  ;;  %v38_v4 = vld [vmem:[%s390_s1] sm:$0x1]  ;;  %v39_v5 = vld [vmem:[%s390_s1 + $0x1] sm:$0x1]  ;;  %s331_s1 = smov [#allocation6]  }
  0x16   :  { %275 = vset.pattern.permute.xlu0 %v329_v1  ;;  %258 = vmatpush3.msra.mxu0 %v40_v2  ;;  %v199_v6 = vld [vmem:[%s391_s2] sm:$0x3]  ;;  %v205_v10 = vshrl.u32 %v204_v7, 7  ;;  %v330_v19 = vmov 1966171168   ;;  %s242_s2 = sshll.u32 %s331_s1, 4  ;;  %s243_s2 = int_to_ptr.vmem [resolvable:$true] %s242_s2 }
  0x17   :  { %263 = vmatpush3.msra.mxu1 %v41_v3  ;;  %260 = vmatmul.mubr.msk.f32.vlgmr.msra.gmra.mrb[0].mxu0 %vm42_vm2, %v38_v4  ;;  %v220_v20 = vunpack.c.l.s4 %v330_v19  ;;  %vm234_vm3 = vcmask 254976   ;;  %s298_s4 = scalar_lea.vmem %s243_s2, 32  ;;  %p303_p9 = scmp.lt.s32.totalorder %s243_s2, %s243_s2 }
  0x18   :  { %265 = vmatmul.mubr.msk.f32.vlgmr.msra.gmra.mrb[0].mxu1 %vm42_vm2, %v39_v5  ;;  %202 = vperm.xlu0 %275, %v199_v6   ;;  %v206_v17 = vsub.s32 0, %v205_v10  ;;  %v210_v18 = vsub.s32 1, %v205_v10  ;;  %p299_p8 = scmp.ne.s32.totalorder %s243_s2, %s298_s4  ;;  %p304_p10 = scmp.lt.s32.totalorder %s298_s4, %s298_s4 }
  0x19   :  { %v221_v22 = vunpack.c.0.s8 %v220_v20 }
  0x1a   :  { %p305_p11 = por %p304_p10, %p303_p9 }
  0x1b   :  { %v36_v8 = vld [vmem:[#allocation2] sm:$0x1]  ;;  %v37_v9 = vld [vmem:[#allocation2 + $0x1] sm:$0x1]  ;;  %v224_v27 = vsub.s32 %v221_v22, %v205_v10 }
  0x1c   :  { %p306_p12 = pnand %p305_p11, %p299_p8 }
  0x97   :  { %v203_v21 = vpop.permute.xlu0 %202 }
  0x98   :  { %v207_v23 = vrot.slane %v203_v21, %v206_v17  ;;  %v211_v24 = vrot.slane %v203_v21, %v210_v18 }
  0xea   :  { %v112_v11 = vpop.f32.mrb[0].mxu0 }
  0xeb   :  { %v185_v12 = vpop.f32.mrb[0].mxu1  ;;  %v189_v13 = vadd.f32 %v112_v11, %v36_v8  ;;  %v261_v15 = vpop.f32.mrb[1].mxu0 }
  0xec   :  { %v190_v14 = vadd.f32 %v185_v12, %v37_v9  ;;  %v266_v16 = vpop.f32.mrb[1].mxu1 }
  0xed   :  { %192 = vst.msk [vmem:[#allocation2] sm:$0x1] %vm33_vm0, %v189_v13 }
  0xee   :  { %193 = vst.msk [vmem:[#allocation2 + $0x1] sm:$0x1] %vm33_vm0, %v190_v14 }
  0xf4   :  { %v197_v25 = vld [vmem:[#allocation2] sm:$0x1] }
  0xf5   :  { %v198_v26 = vld [vmem:[#allocation2 + $0x1] sm:$0x1]  ;;  %v214_v28 = vmul.f32 %v207_v23, %v197_v25 }
  0xf6   :  { %v215_v29 = vmul.f32 %v211_v24, %v198_v26 }
  0xf8   :  { %v218_v30 = vcombine.low %v214_v28, %v215_v29 }
  0xfa   :  { %v225_v31 = vrot.slane %v218_v30, %v224_v27 }
  0xfc   :  { %v232_v32 = vrot.slane %v225_v31, %v224_v27 }
  0xfe   :  { %235 = vst.msk [vmem:[#allocation6] sm:$0x3] %vm234_vm3, %v232_v32 }
  0xff   :  { %309 = shalt.err (!%p306_p12)
}
 0x100   :  { %s310_s7 = scalar_lea.hbm %s392_s3, 32 }
 0x101   :  { %p311_p13 = scmp.ne.s32.totalorder %s392_s3, %s310_s7  ;;  %p314_p0 = scmp.lt.u32.totalorder %s310_s7, %s392_s3 }
 0x103   :  { %p316_p1 = pnand %p314_p0, %p311_p13 }
 0x105   :  { %319 = shalt.err (!%p316_p1)
}
 0x106   :  { %245 = dma.vmem_to_hbm [thread:$0]  %s243_s2, 32, %s392_s3, [#allocation5]  }
 0x107   :  { %322 = dma.done.wait [#allocation5], 32  }
 0x108   :  { %323 = vsyncadd [#allocation5], 4294967264 }
 0x109   :  { %249 = vsyncpa [#allocation4], 1 }
 0x10a   :  { %250 = vsyncpa [#allocation5], 1 }

</bundles_post_ra>
